<compile_context>
chip_gen: v6e
topology: v6e:2x2x1
jax: 0.10.0
libtpu: 0.0.40
codegen_flags: <defaults>
</compile_context>

<pallas_src>
import functools

import jax
import jax.numpy as jnp
from jax.experimental import pallas as pl
from jax.experimental.pallas import tpu as pltpu


# ----------------------------------------------------------------------------
# Fused kernel: acc += x_tile @ W_tile (bf16 MXU, f32 acc); on the last K step
# apply bias, LayerNorm (one-pass stats, f32) and ReLU, then store.
# ----------------------------------------------------------------------------
def fc_kernel(x_ref, w_ref, p_ref, out_ref, acc_ref, *, eps, inv_out_dim):
    k = pl.program_id(1)

    @pl.when(k == 0)
    def _init():
        acc_ref[...] = jnp.zeros_like(acc_ref)

    # bf16 x bf16 -> f32 accumulate on the MXU.
    acc_ref[...] += jnp.dot(x_ref[...], w_ref[...],
                            preferred_element_type=jnp.float32)

    @pl.when(k == pl.num_programs(1) - 1)
    def _finalize():
        bias = p_ref[0:1, :].astype(jnp.float32)
        gamma = p_ref[1:2, :].astype(jnp.float32)
        beta = p_ref[2:3, :].astype(jnp.float32)

        y = acc_ref[...] + bias

        # One-pass LayerNorm stats over the feature (lane) axis, all in f32.
        s1 = jnp.sum(y, axis=-1, keepdims=True)
        s2 = jnp.sum(y * y, axis=-1, keepdims=True)
        mean = s1 * inv_out_dim
        var = jnp.maximum(s2 * inv_out_dim - mean * mean, 0.0)
        yn = (y - mean) * jax.lax.rsqrt(var + eps)
        yn = yn * gamma + beta

        # ReLU + lane-dense store.
        out_ref[...] = jnp.maximum(yn, 0.0).astype(out_ref.dtype)


# ----------------------------------------------------------------------------
# Wrapper
# ----------------------------------------------------------------------------
def fc_forward(x, w, b, gamma, beta, *, eps=1e-5, block_rows=256, block_k=512,
               matmul_dtype=jnp.bfloat16, out_dtype=None):
    """ReLU(LayerNorm(x @ W + b)).

    x: [N, in_dim]; w: [in_dim, out_dim]; b/gamma/beta: [1, out_dim] (or [out_dim]).
    """
    n, in_dim = x.shape
    out_dim = w.shape[1]
    out_dtype = out_dtype or x.dtype

    # --- K tiling: only exact divisors (a partial K block would accumulate
    # out-of-bounds garbage into the result).  Small in_dim => single K step.
    bk = block_k if (in_dim % block_k == 0) else in_dim

    # --- Row tile: multiple of 8 sublanes, capped at block_rows, then shrunk
    # until the double-buffered working set fits a conservative VMEM budget
    # (keeps the kernel valid on v7x's 64 MiB VMEM / 32 MiB scoped default).
    mm_bytes = jnp.dtype(matmul_dtype).itemsize
    out_bytes = jnp.dtype(out_dtype).itemsize

    def footprint(bm_):
        x_b = 2 * bm_ * bk * mm_bytes            # double-buffered x tile
        w_b = 2 * bk * out_dim * mm_bytes        # double-buffered W tile
        o_b = 2 * bm_ * out_dim * out_bytes      # double-buffered out tile
        acc_b = bm_ * out_dim * 4                # f32 accumulator scratch
        p_b = 8 * out_dim * 4                    # packed params (sublane-padded)
        return x_b + w_b + o_b + acc_b + p_b

    vmem_budget = 24 * 1024 * 1024
    bm = max(8, min(block_rows, ((n + 7) // 8) * 8))
    bm = (bm // 8) * 8
    while bm > 8 and footprint(bm) > vmem_budget:
        bm = max(8, ((bm // 2) // 8) * 8)

    grid = (pl.cdiv(n, bm), in_dim // bk)

    # Pack bias / gamma / beta into one (3, out_dim) array: one DMA, one buffer.
    params = jnp.concatenate(
        [jnp.reshape(b, (1, out_dim)),
         jnp.reshape(gamma, (1, out_dim)),
         jnp.reshape(beta, (1, out_dim))], axis=0).astype(jnp.float32)

    x_c = x.astype(matmul_dtype)
    w_c = w.astype(matmul_dtype)

    kernel = functools.partial(fc_kernel, eps=eps, inv_out_dim=1.0 / out_dim)

    out = pl.pallas_call(
        kernel,
        out_shape=jax.ShapeDtypeStruct((n, out_dim), out_dtype),
        grid=grid,
        in_specs=[
            pl.BlockSpec((bm, bk), lambda i, k: (i, k)),        # x row/K tile
            pl.BlockSpec((bk, out_dim), lambda i, k: (k, 0)),   # W K tile
            pl.BlockSpec((3, out_dim), lambda i, k: (0, 0)),    # b/gamma/beta
        ],
        out_specs=pl.BlockSpec((bm, out_dim), lambda i, k: (i, 0)),
        scratch_shapes=[pltpu.VMEM((bm, out_dim), jnp.float32)],
        compiler_params=pltpu.CompilerParams(
            dimension_semantics=("parallel", "arbitrary"),
            vmem_limit_bytes=32 * 1024 * 1024,
        ),
    )(x_c, w_c, params)

    return out


# ----------------------------------------------------------------------------
# Pure-JAX reference (mirrors nn.Linear -> nn.LayerNorm(eps=1e-5) -> ReLU), f32.
# ----------------------------------------------------------------------------
def fc_reference(x, w, b, gamma, beta, eps=1e-5):
    y = x @ w + b
    mean = jnp.mean(y, axis=-1, keepdims=True)
    var = jnp.mean(jnp.square(y - mean), axis=-1, keepdims=True)
    yn = (y - mean) * jax.lax.rsqrt(var + eps) * gamma + beta
    return jnp.maximum(yn, 0.0)


# ----------------------------------------------------------------------------
if __name__ == "__main__":
    num_rows, in_dim, out_dim = 16, 64, 128

    key = jax.random.PRNGKey(0)
    kx, kw, kb = jax.random.split(key, 3)
    x = jax.random.normal(kx, (num_rows, in_dim), jnp.float32)

    # nn.Linear-style init (weight stored transposed: [in_dim, out_dim]).
    bound = 1.0 / (in_dim ** 0.5)
    w = jax.random.uniform(kw, (in_dim, out_dim), jnp.float32, -bound, bound)
    b = jax.random.uniform(kb, (1, out_dim), jnp.float32, -bound, bound)
    gamma = jnp.ones((1, out_dim), jnp.float32)   # LayerNorm weight init
    beta = jnp.zeros((1, out_dim), jnp.float32)   # LayerNorm bias init

    out = fc_forward(x, w, b, gamma, beta)
    jax.block_until_ready(out)

    ref = fc_reference(x, w, b, gamma, beta)
    assert out.shape == (num_rows, out_dim)
    # bf16 matmul operands (f32 accumulate) => loosened tolerance vs f32 reference.
    assert jnp.allclose(out, ref, atol=2e-2, rtol=2e-2)

    print("KERNEL_OK")
</pallas_src>

<mosaic_0001>
module attributes {stable_mosaic.version = 11 : i64} {
  func.func @fc_kernel(%arg0: i32, %arg1: i32, %arg2: memref<16x64xbf16, #tpu.memory_space<vmem>>, %arg3: memref<64x128xbf16, #tpu.memory_space<vmem>>, %arg4: memref<3x128xf32, #tpu.memory_space<vmem>>, %arg5: memref<16x128xf32, #tpu.memory_space<vmem>>, %arg6: memref<16x128xf32, #tpu.memory_space<vmem>>) attributes {dimension_semantics = [#tpu.dimension_semantics<parallel>, #tpu.dimension_semantics<arbitrary>], iteration_bounds = array<i64: 1, 1>, scalar_prefetch = 0 : i64, scratch_operands = 1 : i64, tpu.core_type = #tpu.core_type<tc>, window_params = [{transform_indices = @transform_0, window_bounds = array<i64: 16, 64>}, {transform_indices = @transform_1, window_bounds = array<i64: 64, 128>}, {pipeline_mode = #tpu.pipeline_mode<synchronous>, transform_indices = @transform_2, window_bounds = array<i64: 3, 128>}, {transform_indices = @transform_3, window_bounds = array<i64: 16, 128>}]} {
    %c0_i32 = arith.constant 0 : i32
    %0 = arith.cmpi eq, %arg1, %c0_i32 : i32
    %1 = arith.extui %0 : i1 to i32
    %c0_i32_0 = arith.constant 0 : i32
    %2 = arith.cmpi ne, %1, %c0_i32_0 : i32
    scf.if %2 {
      %cst_10 = arith.constant 0.000000e+00 : f32
      %12 = vector.broadcast %cst_10 : f32 to vector<16x128xf32>
      %c0_11 = arith.constant 0 : index
      %c0_12 = arith.constant 0 : index
      %13 = vector.load %arg6[%c0_11, %c0_12] : memref<16x128xf32, #tpu.memory_space<vmem>>, vector<16x128xf32>
      tpu.vector_store %arg6[%c0_11, %c0_12], %12 {strides = array<i32>} : memref<16x128xf32, #tpu.memory_space<vmem>>, vector<16x128xf32>,
    } else {
    }
    %c0 = arith.constant 0 : index
    %c0_1 = arith.constant 0 : index
    %3 = vector.load %arg6[%c0, %c0_1] : memref<16x128xf32, #tpu.memory_space<vmem>>, vector<16x128xf32>
    %c0_2 = arith.constant 0 : index
    %c0_3 = arith.constant 0 : index
    %4 = vector.load %arg2[%c0_2, %c0_3] : memref<16x64xbf16, #tpu.memory_space<vmem>>, vector<16x64xbf16>
    %c0_4 = arith.constant 0 : index
    %c0_5 = arith.constant 0 : index
    %5 = vector.load %arg3[%c0_4, %c0_5] : memref<64x128xbf16, #tpu.memory_space<vmem>>, vector<64x128xbf16>
    %cst = arith.constant dense<0.000000e+00> : vector<16x128xf32>
    %6 = tpu.matmul %4, %5, %cst {dimension_numbers = #tpu.dot_dimension_numbers<[1], [0], [0], [1], [0, 0, 1, 1], [], []>} : vector<16x64xbf16>, vector<64x128xbf16>, vector<16x128xf32> -> vector<16x128xf32>
    %7 = arith.addf %3, %6 : vector<16x128xf32>
    %c0_6 = arith.constant 0 : index
    %c0_7 = arith.constant 0 : index
    %8 = vector.load %arg6[%c0_6, %c0_7] : memref<16x128xf32, #tpu.memory_space<vmem>>, vector<16x128xf32>
    tpu.vector_store %arg6[%c0_6, %c0_7], %7 {strides = array<i32>} : memref<16x128xf32, #tpu.memory_space<vmem>>, vector<16x128xf32>,
    %c0_i32_8 = arith.constant 0 : i32
    %9 = arith.cmpi eq, %arg1, %c0_i32_8 : i32
    %10 = arith.extui %9 : i1 to i32
    %c0_i32_9 = arith.constant 0 : i32
    %11 = arith.cmpi ne, %10, %c0_i32_9 : i32
    scf.if %11 {
      %c0_10 = arith.constant 0 : index
      %c0_11 = arith.constant 0 : index
      %12 = vector.load %arg4[%c0_10, %c0_11] : memref<3x128xf32, #tpu.memory_space<vmem>>, vector<1x128xf32>
      %c1 = arith.constant 1 : index
      %c0_12 = arith.constant 0 : index
      %13 = vector.load %arg4[%c1, %c0_12] : memref<3x128xf32, #tpu.memory_space<vmem>>, vector<1x128xf32>
      %c2 = arith.constant 2 : index
      %c0_13 = arith.constant 0 : index
      %14 = vector.load %arg4[%c2, %c0_13] : memref<3x128xf32, #tpu.memory_space<vmem>>, vector<1x128xf32>
      %c0_14 = arith.constant 0 : index
      %c0_15 = arith.constant 0 : index
      %15 = vector.load %arg6[%c0_14, %c0_15] : memref<16x128xf32, #tpu.memory_space<vmem>>, vector<16x128xf32>
      %16 = vector.broadcast %12 : vector<1x128xf32> to vector<16x128xf32>
      %17 = arith.addf %15, %16 : vector<16x128xf32>
      %cst_16 = arith.constant dense<0.000000e+00> : vector<16xf32>
      %18 = vector.multi_reduction <add>, %17, %cst_16 [1] : vector<16x128xf32> to vector<16xf32>
      %19 = vector.shape_cast %18 : vector<16xf32> to vector<16x1xf32>
      %20 = arith.mulf %17, %17 : vector<16x128xf32>
      %cst_17 = arith.constant dense<0.000000e+00> : vector<16xf32>
      %21 = vector.multi_reduction <add>, %20, %cst_17 [1] : vector<16x128xf32> to vector<16xf32>
      %22 = vector.shape_cast %21 : vector<16xf32> to vector<16x1xf32>
      %cst_18 = arith.constant 7.812500e-03 : f32
      %23 = vector.broadcast %cst_18 : f32 to vector<16x1xf32>
      %24 = arith.mulf %19, %23 : vector<16x1xf32>
      %cst_19 = arith.constant 7.812500e-03 : f32
      %25 = vector.broadcast %cst_19 : f32 to vector<16x1xf32>
      %26 = arith.mulf %22, %25 : vector<16x1xf32>
      %27 = arith.mulf %24, %24 : vector<16x1xf32>
      %28 = arith.subf %26, %27 : vector<16x1xf32>
      %cst_20 = arith.constant 0.000000e+00 : f32
      %29 = vector.broadcast %cst_20 : f32 to vector<16x1xf32>
      %30 = arith.maximumf %28, %29 : vector<16x1xf32>
      %31 = vector.broadcast %24 : vector<16x1xf32> to vector<16x128xf32>
      %32 = arith.subf %17, %31 : vector<16x128xf32>
      %cst_21 = arith.constant 9.99999974E-6 : f32
      %33 = vector.broadcast %cst_21 : f32 to vector<16x1xf32>
      %34 = arith.addf %30, %33 : vector<16x1xf32>
      %35 = math.rsqrt %34 : vector<16x1xf32>
      %36 = vector.broadcast %35 : vector<16x1xf32> to vector<16x128xf32>
      %37 = arith.mulf %32, %36 : vector<16x128xf32>
      %38 = vector.broadcast %13 : vector<1x128xf32> to vector<16x128xf32>
      %39 = arith.mulf %37, %38 : vector<16x128xf32>
      %40 = vector.broadcast %14 : vector<1x128xf32> to vector<16x128xf32>
      %41 = arith.addf %39, %40 : vector<16x128xf32>
      %cst_22 = arith.constant 0.000000e+00 : f32
      %42 = vector.broadcast %cst_22 : f32 to vector<16x128xf32>
      %43 = arith.maximumf %41, %42 : vector<16x128xf32>
      %c0_23 = arith.constant 0 : index
      %c0_24 = arith.constant 0 : index
      %44 = vector.load %arg5[%c0_23, %c0_24] : memref<16x128xf32, #tpu.memory_space<vmem>>, vector<16x128xf32>
      tpu.vector_store %arg5[%c0_23, %c0_24], %43 {strides = array<i32>} : memref<16x128xf32, #tpu.memory_space<vmem>>, vector<16x128xf32>,
    } else {
    }
    return
  }
  func.func @transform_0(%arg0: i32, %arg1: i32) -> (i32, i32) {
    %c0_i32 = arith.constant 0 : i32
    return %arg0, %arg1 : i32, i32
  }
  func.func @transform_1(%arg0: i32, %arg1: i32) -> (i32, i32) {
    %c0_i32 = arith.constant 0 : i32
    %c0_i32_0 = arith.constant 0 : i32
    return %arg1, %c0_i32 : i32, i32
  }
  func.func @transform_2(%arg0: i32, %arg1: i32) -> (i32, i32) {
    %c0_i32 = arith.constant 0 : i32
    %c0_i32_0 = arith.constant 0 : i32
    %c0_i32_1 = arith.constant 0 : i32
    return %c0_i32, %c0_i32_0 : i32, i32
  }
  func.func @transform_3(%arg0: i32, %arg1: i32) -> (i32, i32) {
    %c0_i32 = arith.constant 0 : i32
    %c0_i32_0 = arith.constant 0 : i32
    return %arg0, %c0_i32 : i32, i32
  }
}

</mosaic_0001>

<bundles_post_ra>
// kernel: tpu_custom_call.1
= control target key start
LH: loop header
LB: loop body
LE: loop exit
PB: predicated region body
PF: predicated region fallthrough
CT: control target
= control target key end

     0   :  { %8 = vsyncpa [#allocation4], 0  ;;  %s400_s0 = inlined_call_operand.hbm [shape: bf16[16,64], index: 0, kind: input, shape index: {}]   ;;  %s401_s1 = inlined_call_operand.hbm [shape: bf16[64,128], index: 1, kind: input, shape index: {}]   ;;  %s402_s2 = inlined_call_operand.hbm [shape: f32[3,128], index: 2, kind: input, shape index: {}]   ;;  %s403_s3 = inlined_call_operand.hbm [shape: f32[16,128], index: 3, kind: output, shape index: {}]  }
   0x1   :  { %9 = vsyncpa [#allocation7], 0 }
   0x2   :  { %10 = vsyncpa [#allocation5], 0  ;;  %s358_s12 = smov [#allocation6]   ;;  %s359_s14 = smov [#allocation3]  }
   0x3   :  { %s28_s13 = sshll.u32 %s358_s12, 4  ;;  %s16_s15 = sshll.u32 %s359_s14, 4  ;;  %s29_s13 = int_to_ptr.vmem [resolvable:$true] %s28_s13  ;;  %s17_s15 = int_to_ptr.vmem [resolvable:$true] %s16_s15 }
   0x4   :  { %s280_s16 = scalar_lea.vmem %s29_s13, 512  ;;  %p285_p1 = scmp.lt.s32.totalorder %s29_s13, %s29_s13 }
   0x5   :  { %p281_p0 = scmp.ne.s32.totalorder %s29_s13, %s280_s16  ;;  %p286_p2 = scmp.lt.s32.totalorder %s280_s16, %s280_s16 }
   0x7   :  { %p287_p3 = por %p286_p2, %p285_p1 }
   0x9   :  { %p288_p4 = pnand %p287_p3, %p281_p0 }
   0xb   :  { %291 = shalt.err (!%p288_p4)
}
   0xc   :  { %s360_s17 = smov 64   ;;  %s361_s18 = smov 4  }
   0xd   :  { %34 = dma.hbm_to_vmem [thread:$0]  %s401_s1, 512, %s29_s13, [#allocation7], %s360_s17, %s360_s17, %s361_s18  }
   0xe   :  { %s300_s21 = scalar_lea.vmem %s17_s15, 128  ;;  %p305_p6 = scmp.lt.s32.totalorder %s17_s15, %s17_s15 }
   0xf   :  { %p301_p5 = scmp.ne.s32.totalorder %s17_s15, %s300_s21  ;;  %p306_p7 = scmp.lt.s32.totalorder %s300_s21, %s300_s21 }
  0x11   :  { %p307_p8 = por %p306_p7, %p305_p6 }
  0x13   :  { %p308_p9 = pnand %p307_p8, %p301_p5 }
  0x15   :  { %311 = shalt.err (!%p308_p9)
}
  0x16   :  { %22 = dma.hbm_to_vmem [thread:$0]  %s400_s0, 128, %s17_s15, [#allocation4], %s360_s17, %s360_s17, %s361_s18  }
  0x17   :  { %s362_s24 = smov [#allocation8]  }
  0x18   :  { %s41_s25 = sshll.u32 %s362_s24, 4  ;;  %s42_s25 = int_to_ptr.vmem [resolvable:$true] %s41_s25 }
  0x19   :  { %s320_s26 = scalar_lea.vmem %s42_s25, 64  ;;  %p325_p11 = scmp.lt.s32.totalorder %s42_s25, %s42_s25 }
  0x1a   :  { %p321_p10 = scmp.ne.s32.totalorder %s42_s25, %s320_s26  ;;  %p326_p12 = scmp.lt.s32.totalorder %s320_s26, %s320_s26 }
  0x1c   :  { %p327_p13 = por %p326_p12, %p325_p11 }
  0x1e   :  { %p328_p0 = pnand %p327_p13, %p321_p10 }
  0x20   :  { %331 = shalt.err (!%p328_p0)
}
  0x21   :  { %44 = dma.hbm_to_vmem [thread:$0]  %s402_s2, 64, %s42_s25, [#allocation7]  }
  0x22   :  { %352 = dma.done.wait [#allocation4], 128  }
  0x23   :  { %353 = vsyncadd [#allocation4], 4294967168 }
  0x24   :  { %354 = dma.done.wait [#allocation7], 576  }
  0x25   :  { %355 = vsyncadd [#allocation7], 4294966720  ;;  %v363_v0 = vmov 0.0   ;;  %vm364_vm0 = vmmov 0   ;;  %v263_v1 = vld [vmem:[#allocation6 + $0x18] sm:$0xff]   ;;  %v264_v2 = vld [vmem:[#allocation6 + $0x10] sm:$0xff]  }
  0x26   :  { %241 = vmatprep.subr.bf16.mxu0 %v363_v0  ;;  %249 = vmatprep.mubr.msk.bf16.mxu0 %vm364_vm0, %v363_v0  ;;  %v265_v3 = vld [vmem:[#allocation6 + $0x8] sm:$0xff]   ;;  %v266_v4 = vld [vmem:[#allocation6] sm:$0xff]   ;;  %v267_v5 = vld [vmem:[#allocation3] sm:$0xff]   ;;  %vm102_vm1 = vcmask 523264   ;;  %s365_s0 = smov [#allocation9]  }
  0x27   :  { %242 = vmatpush3.bf16.msra.mxu0 %v263_v1  ;;  %v233_v6 = vld [vmem:[#allocation8] ss:$0 sm:$0xff]  ;;  %v234_v33 = vld [vmem:[#allocation8 + $0x1] ss:$0 sm:$0xff]  ;;  %v235_v35 = vld [vmem:[#allocation8 + $0x2] ss:$0 sm:$0xff] }
  0x28   :  { %243 = vmatprep.subr.bf16.mxu0 %v363_v0  ;;  %s214_s2 = sshll.u32 %s365_s0, 4  ;;  %s215_s2 = int_to_ptr.vmem [resolvable:$true] %s214_s2 }
  0x29   :  { %s332_s28 = scalar_lea.vmem %s215_s2, 256  ;;  %p337_p2 = scmp.lt.s32.totalorder %s215_s2, %s215_s2 }
  0x2a   :  { %p333_p1 = scmp.ne.s32.totalorder %s215_s2, %s332_s28  ;;  %p338_p3 = scmp.lt.s32.totalorder %s332_s28, %s332_s28 }
  0x2b   :  { %244 = vmatpush3.bf16.msra.mxu0 %v264_v2 }
  0x2c   :  { %245 = vmatprep.subr.bf16.mxu0 %v363_v0  ;;  %p339_p4 = por %p338_p3, %p337_p2 }
  0x2e   :  { %p340_p5 = pnand %p339_p4, %p333_p1 }
  0x2f   :  { %246 = vmatpush3.bf16.msra.mxu0 %v265_v3 }
  0x30   :  { %247 = vmatprep.subr.bf16.mxu0 %v363_v0 }
  0x33   :  { %248 = vmatpush3.bf16.msra.mxu0 %v266_v4 }
  0x36   :  { %250 = vmatmul.mubr.msk.bf16.vlgmr.msra.gmra.mxu0 %vm102_vm1, %v267_v5 }
  0xf6   :  { %v140_v7 = vpop.f32.mrf.mxu0 }
  0xf7   :  { %v163_v8 = vadd.f32 %v233_v6, %v140_v7 }
  0xf8   :  { %v251_v9 = vpop.f32.mrf.mxu0 }
  0xf9   :  { %165 = vadd.xlane.f32.xlu0 %v163_v8  ;;  %v169_v10 = vmul.f32 %v163_v8, %v163_v8 }
  0xfa   :  { %v143_v11 = vpop.f32.mrf.mxu0 }
  0xfb   :  { %v164_v12 = vadd.f32 %v233_v6, %v143_v11  ;;  %171 = vadd.xlane.f32.xlu1 %v169_v10 }
  0xfc   :  { %v252_v13 = vpop.f32.mrf.mxu0 }
  0xfd   :  { %167 = vadd.xlane.f32.xlu0 %v164_v12  ;;  %v170_v14 = vmul.f32 %v164_v12, %v164_v12 }
  0xff   :  { %173 = vadd.xlane.f32.xlu1 %v170_v14 }
 0x182   :  { %v166_v15 = vpop.xlane.xlu0 %165 }
 0x183   :  { %v175_v16 = vmul.f32 0.0078125, %v166_v15 }
 0x184   :  { %v172_v17 = vpop.xlane.xlu1 %171 }
 0x185   :  { %v179_v18 = vmul.f32 %v175_v16, %v175_v16  ;;  %v177_v19 = vmul.f32 0.0078125, %v172_v17  ;;  %v185_v31 = vsub.f32 %v163_v8, %v175_v16 }
 0x186   :  { %v168_v20 = vpop.xlane.xlu0 %167 }
 0x187   :  { %v181_v21 = vsub.f32 %v177_v19, %v179_v18  ;;  %v176_v22 = vmul.f32 0.0078125, %v168_v20 }
 0x188   :  { %v174_v23 = vpop.xlane.xlu1 %173 }
 0x189   :  { %v183_v24 = vmax.f32 %v181_v21, 0.0  ;;  %v180_v25 = vmul.f32 %v176_v22, %v176_v22  ;;  %v178_v26 = vmul.f32 0.0078125, %v174_v23  ;;  %v186_v36 = vsub.f32 %v164_v12, %v176_v22 }
 0x18b   :  { %v187_v27 = vadd.f32 1e-05, %v183_v24  ;;  %v182_v28 = vsub.f32 %v178_v26, %v180_v25 }
 0x18d   :  { %268 = vrsqrt.f32 %v187_v27  ;;  %v184_v29 = vmax.f32 %v182_v28, 0.0 }
 0x18f   :  { %v188_v30 = vadd.f32 1e-05, %v184_v29 }
 0x191   :  { %270 = vrsqrt.f32 %v188_v30 }
 0x19a   :  { %v269_v32 = vpop.eup %268 }
 0x19b   :  { %v191_v34 = vmul.f32 %v269_v32, %v185_v31 }
 0x19d   :  { %v197_v37 = vmul.f32 %v234_v33, %v191_v34 }
 0x19e   :  { %v271_v38 = vpop.eup %270 }
 0x19f   :  { %v192_v39 = vmul.f32 %v271_v38, %v186_v36  ;;  %v203_v40 = vadd.f32 %v235_v35, %v197_v37 }
 0x1a1   :  { %v198_v41 = vmul.f32 %v234_v33, %v192_v39  ;;  %v205_v42 = vmax.f32 %v203_v40, 0.0 }
 0x1a3   :  { %v204_v43 = vadd.f32 %v235_v35, %v198_v41  ;;  %207 = vst [vmem:[#allocation9] sm:$0xff] %v205_v42 }
 0x1a5   :  { %v206_v44 = vmax.f32 %v204_v43, 0.0 }
 0x1a7   :  { %208 = vst [vmem:[#allocation9 + $0x8] sm:$0xff] %v206_v44 }
 0x1a8   :  { %343 = shalt.err (!%p340_p5)
}
 0x1a9   :  { %s366_s29 = smov 128   ;;  %s367_s30 = smov 8  }
 0x1aa   :  { %220 = dma.vmem_to_hbm [thread:$0]  %s215_s2, 256, %s403_s3, [#allocation5], %s366_s29, %s366_s29, %s367_s30  }
 0x1ab   :  { %356 = dma.done.wait [#allocation5], 256  }
 0x1ac   :  { %357 = vsyncadd [#allocation5], 4294967040 }
 0x1ad   :  { %224 = vsyncpa [#allocation4], 1 }
 0x1ae   :  { %225 = vsyncpa [#allocation7], 1 }
 0x1af   :  { %226 = vsyncpa [#allocation5], 1 }

</bundles_post_ra>
